<compile_context>
chip_gen: v7x
topology: tpu7x:2x2x1
jax: 0.10.0
libtpu: 0.0.40
codegen_flags: <defaults>
</compile_context>

<pallas_src>
import functools

import jax
import jax.numpy as jnp
from jax import lax
from jax.experimental import pallas as pl
from jax.experimental.pallas import tpu as pltpu

LANE = 128  # TPU lane width.


def _round_up(x, m):
    return (x + m - 1) // m * m


def _detector_kernel(xT_ref, wT_ref, wfc_ref, bfc_ref, out_ref, *,
                     n_chunks, n_spatial, cpad):
    """One batch sample per grid step.

    xT_ref:  [1, n_chunks, kpad, m_blk] bf16  transposed conv patches (+ones row)
    wT_ref:  [cpad, kpad]               bf16  per-tap conv weights + bias column
    wfc_ref: [cpad, 128]                f32   classifier weight (cols >= 2 zero)
    bfc_ref: [1, 128]                   f32   classifier bias   (cols >= 2 zero)
    out_ref: [1, 8, 128]                f32   logits (row 0, cols 0:2 are real)
    """
    wT = wT_ref[...]  # loop-invariant

    def chunk_pooled_sum(c):
        x_chunk = xT_ref[0, c]                               # (kpad, m_blk) bf16
        # Fused 3x3 conv + bias as one K=kpad MXU matmul (f32 accumulation).
        feat = jnp.dot(wT, x_chunk, preferred_element_type=jnp.float32)
        # Swish / SiLU in f32 (keep f32 elementwise so v5e is happy too).
        feat = feat * jax.nn.sigmoid(feat)
        # Padded spatial columns are all-zero (incl. the ones/bias row), so
        # swish(0) = 0 and they contribute nothing: no mask required.
        return jnp.sum(feat, axis=-1, keepdims=True)         # (cpad, 1) f32

    if n_chunks == 1:
        acc = chunk_pooled_sum(0)
    else:
        acc = lax.fori_loop(
            0, n_chunks,
            lambda c, a: a + chunk_pooled_sum(c),
            jnp.zeros((cpad, 1), jnp.float32))

    # Global-average-pool over the true (unpadded) spatial extent.
    pooled = acc * jnp.float32(1.0 / n_spatial)              # (cpad, 1)
    # FC head on VPU/XLU: lane-broadcast multiply + sublane reduce
    # (skips a wasteful N=2 MXU pass).
    logits = jnp.sum(pooled * wfc_ref[...], axis=0, keepdims=True) + bfc_ref[...]
    out_ref[...] = jnp.broadcast_to(logits.reshape(1, 1, LANE), out_ref.shape)


def detector_forward(x_nchw, params, *, k=3, stride=2, pad=1, m_blk=256):
    """x_nchw: [N, Cin, H, W] (PyTorch convention) -> logits [N, 2]."""
    w_conv, b_conv, w_fc, b_fc = params
    cout = w_conv.shape[0]
    n, cin, h, w = x_nchw.shape
    ho = (h + 2 * pad - k) // stride + 1
    wo = (w + 2 * pad - k) // stride + 1
    n_spatial = ho * wo

    cpad = _round_up(max(cout, 16), 16)        # channel (sublane) pad, bf16 tile
    kdim = k * k * cin + 1                     # 27 taps + 1 ones-row (conv bias)
    kpad = _round_up(kdim, 32)                 # MXU-friendly contraction width
    m_blk = min(m_blk, _round_up(n_spatial, LANE))   # lane-dense chunk width
    n_cols = _round_up(n_spatial, m_blk)
    n_chunks = n_cols // m_blk

    # ---- layout-only glue (stride-2 3x3 patches: ~2.4x input bytes, bf16) ----
    x_nhwc = jnp.transpose(x_nchw, (0, 2, 3, 1)).astype(jnp.bfloat16)
    xp = jnp.pad(x_nhwc, ((0, 0), (pad, pad), (pad, pad), (0, 0)))
    taps = [xp[:, kh::stride, kw::stride, :][:, :ho, :wo, :]
            for kh in range(k) for kw in range(k)]           # 9 x [N,Ho,Wo,Cin]
    xt = jnp.stack(taps, axis=1)                             # [N,9,Ho,Wo,Cin]
    xt = xt.reshape(n, k * k, n_spatial, cin).transpose(0, 1, 3, 2)
    xt = xt.reshape(n, k * k * cin, n_spatial)                # [N,27,HoWo]
    ones = jnp.ones((n, 1, n_spatial), jnp.bfloat16)          # bias carrier
    xt = jnp.concatenate([xt, ones], axis=1)                  # [N,28,HoWo]
    xt = jnp.pad(xt, ((0, 0), (0, kpad - kdim), (0, n_cols - n_spatial)))
    xt = xt.reshape(n, kpad, n_chunks, m_blk).transpose(0, 2, 1, 3)
    # xt: [N, n_chunks, kpad, m_blk] bf16 (lane-dense, aligned chunks)

    # Conv weights: [Cout,Cin,KH,KW] -> tap-major contraction + bias column.
    wt = jnp.transpose(w_conv, (0, 2, 3, 1)).reshape(cout, k * k * cin)
    wt = jnp.concatenate([wt, b_conv.reshape(cout, 1)], axis=1)       # [Cout,28]
    wt = jnp.pad(wt, ((0, cpad - cout), (0, kpad - kdim))).astype(jnp.bfloat16)

    # FC head, lane-padded to 128 output columns (only cols 0,1 are real).
    wfc = jnp.pad(w_fc.astype(jnp.float32), ((0, cpad - cout), (0, LANE - 2)))
    bfc = jnp.pad(b_fc.reshape(1, 2).astype(jnp.float32), ((0, 0), (0, LANE - 2)))

    kernel = functools.partial(_detector_kernel, n_chunks=n_chunks,
                               n_spatial=n_spatial, cpad=cpad)

    # Cost estimate over the padded work actually performed in-kernel.
    flops = int(n * (2 * n_cols * kpad * cpad        # fused conv matmul
                     + 5 * n_cols * cpad             # swish mul + pooled adds
                     + 3 * cpad * LANE))             # FC multiply + reduce
    transcendentals = int(n * n_cols * cpad)         # sigmoid
    bytes_accessed = int(xt.size * 2 + wt.size * 2
                         + (wfc.size + bfc.size) * 4 + n * 8 * LANE * 4)

    out = pl.pallas_call(
        kernel,
        out_shape=jax.ShapeDtypeStruct((n, 8, LANE), jnp.float32),
        grid_spec=pltpu.PrefetchScalarGridSpec(
            num_scalar_prefetch=0,
            grid=(n,),
            in_specs=[
                # Whole lane-dense sample resident; next sample double-buffered.
                pl.BlockSpec((1, n_chunks, kpad, m_blk), lambda b: (b, 0, 0, 0)),
                pl.BlockSpec((cpad, kpad), lambda b: (0, 0)),
                pl.BlockSpec((cpad, LANE), lambda b: (0, 0)),
                pl.BlockSpec((1, LANE), lambda b: (0, 0)),
            ],
            out_specs=pl.BlockSpec((1, 8, LANE), lambda b: (b, 0, 0)),
        ),
        compiler_params=pltpu.CompilerParams(
            dimension_semantics=("parallel",),
            # Dense layout needs only ~6 MiB even at 380x380; 48 MiB leaves
            # headroom and stays inside v7x's 64 MiB physical VMEM.
            vmem_limit_bytes=48 * 1024 * 1024),
        cost_estimate=pl.CostEstimate(flops=flops,
                                      transcendentals=transcendentals,
                                      bytes_accessed=bytes_accessed),
    )(xt, wt, wfc, bfc)
    return out[:, 0, :2]


def _reference_forward(x_nchw, params, *, k=3, stride=2, pad=1):
    """Pure-JAX reference (lax.conv); emulates the bf16 matmul operands."""
    w_conv, b_conv, w_fc, b_fc = params
    x = jnp.transpose(x_nchw, (0, 2, 3, 1)).astype(jnp.bfloat16).astype(jnp.float32)
    w = jnp.transpose(w_conv, (2, 3, 1, 0)).astype(jnp.bfloat16).astype(jnp.float32)
    b = b_conv.astype(jnp.bfloat16).astype(jnp.float32)
    y = lax.conv_general_dilated(
        x, w, window_strides=(stride, stride),
        padding=[(pad, pad), (pad, pad)],
        dimension_numbers=("NHWC", "HWIO", "NHWC"))
    y = y + b.reshape(1, 1, 1, -1)
    y = y * jax.nn.sigmoid(y)
    pooled = jnp.mean(y, axis=(1, 2))
    return pooled @ w_fc + b_fc.reshape(1, -1)


if __name__ == "__main__":
    key = jax.random.PRNGKey(0)
    k_x, k_wc, k_bc, k_wf, k_bf = jax.random.split(key, 5)

    # Small shapes consistent with the module's image-classifier forward.
    N, Cin, H, W = 2, 3, 16, 16
    Cout, K = 32, 3          # stem width (EfficientNet-B4 uses 48)

    x = jax.random.normal(k_x, (N, Cin, H, W), dtype=jnp.float32)
    w_conv = 0.1 * jax.random.normal(k_wc, (Cout, Cin, K, K), jnp.float32)
    b_conv = 0.1 * jax.random.normal(k_bc, (Cout,), jnp.float32)
    w_fc = 0.1 * jax.random.normal(k_wf, (Cout, 2), jnp.float32)
    b_fc = 0.1 * jax.random.normal(k_bf, (2,), jnp.float32)
    params = (w_conv, b_conv, w_fc, b_fc)

    logits = jax.block_until_ready(detector_forward(x, params))
    ref = _reference_forward(x, params)

    assert logits.shape == (N, 2)
    assert jnp.allclose(logits, ref, atol=2e-3, rtol=2e-3), (logits, ref)
    print("KERNEL_OK")
</pallas_src>

<mosaic_0001>
module attributes {stable_mosaic.version = 11 : i64} {
  func.func @_detector_kernel(%arg0: i32, %arg1: memref<1x1x32x128xbf16, #tpu.memory_space<vmem>>, %arg2: memref<32x32xbf16, #tpu.memory_space<vmem>>, %arg3: memref<32x128xf32, #tpu.memory_space<vmem>>, %arg4: memref<1x128xf32, #tpu.memory_space<vmem>>, %arg5: memref<1x8x128xf32, #tpu.memory_space<vmem>>) attributes {dimension_semantics = [#tpu.dimension_semantics<parallel>], iteration_bounds = array<i64: 2>, scalar_prefetch = 0 : i64, scratch_operands = 0 : i64, tpu.core_type = #tpu.core_type<tc>, window_params = [{transform_indices = @transform_0, window_bounds = array<i64: 1, 1, 32, 128>}, {pipeline_mode = #tpu.pipeline_mode<synchronous>, transform_indices = @transform_1, window_bounds = array<i64: 32, 32>}, {pipeline_mode = #tpu.pipeline_mode<synchronous>, transform_indices = @transform_2, window_bounds = array<i64: 32, 128>}, {pipeline_mode = #tpu.pipeline_mode<synchronous>, transform_indices = @transform_3, window_bounds = array<i64: 1, 128>}, {transform_indices = @transform_4, window_bounds = array<i64: 1, 8, 128>}]} {
    %c0 = arith.constant 0 : index
    %c0_0 = arith.constant 0 : index
    %0 = vector.load %arg2[%c0, %c0_0] : memref<32x32xbf16, #tpu.memory_space<vmem>>, vector<32x32xbf16>
    %c0_1 = arith.constant 0 : index
    %c0_2 = arith.constant 0 : index
    %c0_3 = arith.constant 0 : index
    %c0_4 = arith.constant 0 : index
    %1 = vector.load %arg1[%c0_1, %c0_2, %c0_3, %c0_4] : memref<1x1x32x128xbf16, #tpu.memory_space<vmem>>, vector<1x1x32x128xbf16>
    %2 = vector.shape_cast %1 : vector<1x1x32x128xbf16> to vector<32x128xbf16>
    %cst = arith.constant dense<0.000000e+00> : vector<32x128xf32>
    %3 = tpu.matmul %0, %2, %cst {dimension_numbers = #tpu.dot_dimension_numbers<[1], [0], [0], [1], [0, 0, 1, 1], [], []>} : vector<32x32xbf16>, vector<32x128xbf16>, vector<32x128xf32> -> vector<32x128xf32>
    %4 = arith.negf %3 : vector<32x128xf32>
    %5 = math.exp %4 : vector<32x128xf32>
    %cst_5 = arith.constant 1.000000e+00 : f32
    %6 = vector.broadcast %cst_5 : f32 to vector<32x128xf32>
    %7 = arith.addf %6, %5 : vector<32x128xf32>
    %8 = arith.divf %6, %7 : vector<32x128xf32>
    %9 = arith.mulf %3, %8 : vector<32x128xf32>
    %cst_6 = arith.constant dense<0.000000e+00> : vector<32xf32>
    %10 = vector.multi_reduction <add>, %9, %cst_6 [1] : vector<32x128xf32> to vector<32xf32>
    %11 = vector.shape_cast %10 : vector<32xf32> to vector<32x1xf32>
    %cst_7 = arith.constant 1.562500e-02 : f32
    %12 = vector.broadcast %cst_7 : f32 to vector<32x1xf32>
    %13 = arith.mulf %11, %12 : vector<32x1xf32>
    %c0_8 = arith.constant 0 : index
    %c0_9 = arith.constant 0 : index
    %14 = vector.load %arg3[%c0_8, %c0_9] : memref<32x128xf32, #tpu.memory_space<vmem>>, vector<32x128xf32>
    %15 = vector.broadcast %13 : vector<32x1xf32> to vector<32x128xf32>
    %16 = arith.mulf %15, %14 : vector<32x128xf32>
    %cst_10 = arith.constant dense<0.000000e+00> : vector<128xf32>
    %17 = vector.multi_reduction <add>, %16, %cst_10 [0] : vector<32x128xf32> to vector<128xf32>
    %18 = vector.shape_cast %17 : vector<128xf32> to vector<1x128xf32>
    %c0_11 = arith.constant 0 : index
    %c0_12 = arith.constant 0 : index
    %19 = vector.load %arg4[%c0_11, %c0_12] : memref<1x128xf32, #tpu.memory_space<vmem>>, vector<1x128xf32>
    %20 = arith.addf %18, %19 : vector<1x128xf32>
    %21 = vector.shape_cast %20 : vector<1x128xf32> to vector<1x1x128xf32>
    %22 = vector.shape_cast %21 : vector<1x1x128xf32> to vector<1x1x128xf32>
    %23 = vector.broadcast %22 : vector<1x1x128xf32> to vector<1x8x128xf32>
    %c0_13 = arith.constant 0 : index
    %c0_14 = arith.constant 0 : index
    %c0_15 = arith.constant 0 : index
    %24 = vector.load %arg5[%c0_13, %c0_14, %c0_15] : memref<1x8x128xf32, #tpu.memory_space<vmem>>, vector<1x8x128xf32>
    tpu.vector_store %arg5[%c0_13, %c0_14, %c0_15], %23 {strides = array<i32>} : memref<1x8x128xf32, #tpu.memory_space<vmem>>, vector<1x8x128xf32>,
    return
  }
  func.func @transform_0(%arg0: i32) -> (i32, i32, i32, i32) {
    %c0_i32 = arith.constant 0 : i32
    %c0_i32_0 = arith.constant 0 : i32
    %c0_i32_1 = arith.constant 0 : i32
    %c0_i32_2 = arith.constant 0 : i32
    return %arg0, %c0_i32, %c0_i32_0, %c0_i32_1 : i32, i32, i32, i32
  }
  func.func @transform_1(%arg0: i32) -> (i32, i32) {
    %c0_i32 = arith.constant 0 : i32
    %c0_i32_0 = arith.constant 0 : i32
    %c0_i32_1 = arith.constant 0 : i32
    return %c0_i32, %c0_i32_0 : i32, i32
  }
  func.func @transform_2(%arg0: i32) -> (i32, i32) {
    %c0_i32 = arith.constant 0 : i32
    %c0_i32_0 = arith.constant 0 : i32
    %c0_i32_1 = arith.constant 0 : i32
    return %c0_i32, %c0_i32_0 : i32, i32
  }
  func.func @transform_3(%arg0: i32) -> (i32, i32) {
    %c0_i32 = arith.constant 0 : i32
    %c0_i32_0 = arith.constant 0 : i32
    %c0_i32_1 = arith.constant 0 : i32
    return %c0_i32, %c0_i32_0 : i32, i32
  }
  func.func @transform_4(%arg0: i32) -> (i32, i32, i32) {
    %c0_i32 = arith.constant 0 : i32
    %c0_i32_0 = arith.constant 0 : i32
    %c0_i32_1 = arith.constant 0 : i32
    return %arg0, %c0_i32, %c0_i32_0 : i32, i32, i32
  }
}

</mosaic_0001>

<bundles_post_ra>
// kernel: tpu_custom_call.1
= control target key start
LH: loop header
LB: loop body
LE: loop exit
PB: predicated region body
PF: predicated region fallthrough
CT: control target
= control target key end

     0   :  { %9 = vsyncpa [#allocation3], 0  ;;  %s1063_s0 = inlined_call_operand.hbm [shape: bf16[2,1,32,128], index: 0, kind: input, shape index: {}]   ;;  %s1064_s1 = inlined_call_operand.hbm [shape: bf16[32,32], index: 1, kind: input, shape index: {}]   ;;  %s1065_s2 = inlined_call_operand.hbm [shape: f32[32,128], index: 2, kind: input, shape index: {}]   ;;  %s1066_s3 = inlined_call_operand.vmem [shape: f32[1,128], index: 3, kind: input, shape index: {}]   ;;  %s1067_s4 = inlined_call_operand.hbm [shape: f32[2,8,128], index: 4, kind: output, shape index: {}]  }
   0x1   :  { %11 = vsyncpa [#allocation3 + $0x1], 0 }
   0x2   :  { %12 = vsyncpa [#allocation6], 0 }
   0x3   :  { %13 = vsyncpa [#allocation4], 0 }
   0x4   :  { %15 = vsyncpa [#allocation4 + $0x1], 0  ;;  %s821_s15 = smov 0   ;;  %s823_s16 = smov 0  }
   0x5   :  { %s825_s17 = smov 0   ;;  %s827_s18 = smov 0  }
   0x6 LB: > { %s842_s19 = sadd.s32 4294967295, %s786_s18   ;;  %s499_s20 = sadd.s32 4294967294, %s786_s18   ;;  %s786_s18 = sphi %s827_s18, %s1087_s18   ;;  %s782_s17 = sphi %s825_s17, %s1086_s17   ;;  %s778_s16 = sphi %s823_s16, %s1085_s16   ;;  %s774_s15 = sphi %s821_s15, %s1084_s15  }
   0x7   : > { %p41_p0 = scmp.ne.s32.totalorder %s778_s16, %s774_s15  ;;  %p1068_p1 = scmp.eq.s32.totalorder %s842_s19, 0 }
   0x8   : > { %p134_p3 = scmp.eq.s32.totalorder %s499_s20, 1  ;;  %p500_p5 = scmp.ge.s32.totalorder %s786_s18, 1 }
   0x9   : > { %p851_p4 = por %p1068_p1, %p41_p0  ;;  %p141_p7 = scmp.lt.s32.totalorder %s786_s18, 3 }
   0xa   : > { %p856_p6 = por %p134_p3, %p41_p0  ;;  %s788_s24 = smov [#allocation5]  }
   0xb   : > { %s1071_s21 = scalar_select %p851_p4, 1, 0 }
   0xc   : > { %s1072_s22 = scalar_select %p856_p6, 1, 0 }
   0xd   : > { %p861_p8 = pnand %p500_p5, %p141_p7  ;;  %s153_s25 = sshll.u32 %s788_s24, 4  ;;  %s865_s25 = int_to_ptr.vmem [resolvable:$true] %s153_s25 }
   0xe   : > { %s789_s27 = smov [#allocation7]   ;;  %s630_s5 = scalar_lea.hbm %s1064_s1, 256 }
   0xf   : > { %p551_p9 = pneg %p861_p8  ;;  %s166_s28 = sshll.u32 %s789_s27, 4  ;;  %s876_s28 = int_to_ptr.vmem [resolvable:$true] %s166_s28 }
  0x10   : > { %p631_p12 = scmp.ne.s32.totalorder %s1064_s1, %s630_s5  ;;  %p637_p5 = scmp.lt.u32.totalorder %s630_s5, %s1064_s1 }
  0x11   : > { %p872_p11 = pnand %p551_p9, %p1068_p1 }
  0x13   : > { %p632_p13 = pneg %p872_p11 }
  0x15   : > { %p633_p0 = pnand %p632_p13, %p631_p12 }
  0x17   : > { %p634_p3 = pneg %p633_p0 }
  0x19   : > { %p639_p7 = pnand %p637_p5, %p634_p3 }
  0x1b   : > { %642 = shalt.err (!%p639_p7)
}
  0x1c   : > { %s643_s10 = scalar_lea.vmem %s865_s25, 256  ;;  %p651_p2 = scmp.lt.s32.totalorder %s865_s25, %s865_s25 }
  0x1d   : > { %p644_p9 = scmp.ne.s32.totalorder %s865_s25, %s643_s10  ;;  %p652_p12 = scmp.lt.s32.totalorder %s643_s10, %s643_s10 }
  0x1f   : > { %p646_p10 = pnand %p644_p9, %p632_p13  ;;  %p653_p0 = por %p652_p12, %p651_p2 }
  0x21   : > { %p647_p1 = pneg %p646_p10 }
  0x23   : > { %p654_p6 = pnand %p653_p0, %p647_p1 }
  0x25   : > { %657 = shalt.err (!%p654_p6)
}
  0x26   : > { %s790_s11 = smov 64   ;;  %s791_s12 = smov 4  }
  0x27   : > { %554 = dma.hbm_to_vmem [thread:$0]  (!%p872_p11), %s1064_s1, 256, %s865_s25, [#allocation6], %s790_s11, %s790_s11, %s791_s12  }
  0x28   : > { %s658_s27 = scalar_lea.hbm %s1065_s2, 512 }
  0x29   : > { %p659_p1 = scmp.ne.s32.totalorder %s1065_s2, %s658_s27  ;;  %p665_p10 = scmp.lt.u32.totalorder %s658_s27, %s1065_s2 }
  0x2b   : > { %p661_p2 = pnand %p659_p1, %p632_p13 }
  0x2d   : > { %p662_p6 = pneg %p661_p2 }
  0x2f   : > { %p667_p3 = pnand %p665_p10, %p662_p6 }
  0x31   : > { %670 = shalt.err (!%p667_p3)
}
  0x32   : > { %s671_s25 = scalar_lea.vmem %s876_s28, 512  ;;  %p679_p12 = scmp.lt.s32.totalorder %s876_s28, %s876_s28 }
  0x33   : > { %p672_p5 = scmp.ne.s32.totalorder %s876_s28, %s671_s25  ;;  %p680_p0 = scmp.lt.s32.totalorder %s671_s25, %s671_s25 }
  0x35   : > { %p674_p7 = pnand %p672_p5, %p632_p13  ;;  %p681_p1 = por %p680_p0, %p679_p12 }
  0x37   : > { %p675_p9 = pneg %p674_p7 }
  0x39   : > { %p682_p2 = pnand %p681_p1, %p675_p9 }
  0x3b   : > { %685 = shalt.err (!%p682_p2)
}
  0x3c   : > { %s792_s7 = smov 128   ;;  %s793_s8 = smov 8  }
  0x3d   : > { %557 = dma.hbm_to_vmem [thread:$0]  (!%p872_p11), %s1065_s2, 512, %s876_s28, [#allocation6], %s792_s7, %s792_s7, %s793_s8  }
  0x3e   : > { %s934_s13 = sadd.s32 1, %s786_s18   ;;  %s28_s20 = sadd.s32 1, %s782_s17 }
  0x3f   : > { %s25_s14 = ssub.s32 %s786_s18, %s934_s13  ;;  %p35_p6 = scmp.ne.s32.totalorder %s782_s17, %s778_s16 }
  0x40   : > { %p26_p13 = scmp.eq.s32.totalorder %s25_s14, 0  ;;  %p36_p10 = scmp.eq.s32.totalorder %s786_s18, 0 }
  0x41   : > { %p1075_p5 = scmp.eq.s32.totalorder %s842_s19, 1  ;;  %p568_p9 = scmp.lt.s32.totalorder %s786_s18, 2 }
  0x42   : > { %s943_s24 = scalar_select %p26_p13, %s782_s17, %s28_s20  }
  0x43   : > { %p37_p3 = por %p36_p10, %p35_p6  ;;  %p947_p7 = por %p1075_p5, %p35_p6 }
  0x44   : > { %s183_s26 = sand.u32 1, %s782_s17   ;;  %s526_s28 = sshll.u32 %s786_s18, 8 }
  0x45   : > { %s1076_s27 = scalar_select %p947_p7, 1, 0 }
  0x46   : > { %s504_s29 = sshll.u32 %s183_s26, 4  ;;  %s957_s6 = scalar_lea.hbm %s1063_s0, %s526_s28 }
  0x47   : > { %s187_s25 = scalar_lea.vmem [#allocation2], %s504_s29  ;;  %p961_p11 = pnand %p568_p9, %p37_p3 }
  0x48   : > { %s194_s7 = sshll.u32 %s187_s25, 4  ;;  %s965_s9 = scalar_lea.sflag [#allocation3], %s183_s26  ;;  %s959_s7 = int_to_ptr.vmem [resolvable:$true] %s194_s7 }
  0x49   : > { %s686_s10 = scalar_lea.hbm %s957_s6, 256  ;;  %p688_p0 = pneg %p961_p11 }
  0x4a   : > { %p687_p12 = scmp.ne.s32.totalorder %s957_s6, %s686_s10  ;;  %s691_s29 = scalar_lea.hbm %s1063_s0, 512 }
  0x4b   : > { %p692_p13 = scmp.lt.u32.totalorder %s957_s6, %s1063_s0  ;;  %p693_p6 = scmp.lt.u32.totalorder %s691_s29, %s686_s10 }
  0x4c   : > { %p689_p1 = pnand %p688_p0, %p687_p12  ;;  %p695_p3 = scmp.lt.u32.totalorder %s686_s10, %s957_s6 }
  0x4d   : > { %p694_p10 = por %p693_p6, %p692_p13 }
  0x4e   : > { %p690_p2 = pneg %p689_p1 }
  0x4f   : > { %p696_p5 = por %p695_p3, %p694_p10 }
  0x51   : > { %p697_p9 = pnand %p696_p5, %p690_p2 }
  0x53   : > { %700 = shalt.err (!%p697_p9)
}
  0x54   : > { %s701_s26 = scalar_lea.vmem %s959_s7, 256  ;;  %s794_s5 = smov [#allocation2]  }
  0x55   : > { %p702_p12 = scmp.ne.s32.totalorder %s959_s7, %s701_s26  ;;  %s706_s25 = sshll.u32 %s794_s5, 4  ;;  %s707_s25 = int_to_ptr.vmem [resolvable:$false] %s706_s25 }
  0x56   : > { %s708_s14 = scalar_lea.vmem %s707_s25, 512  ;;  %p709_p4 = scmp.lt.s32.totalorder %s959_s7, %s707_s25 }
  0x57   : > { %p704_p1 = pnand %p702_p12, %p688_p0  ;;  %p710_p13 = scmp.lt.s32.totalorder %s708_s14, %s701_s26 }
  0x59   : > { %p705_p7 = pneg %p704_p1  ;;  %p711_p6 = por %p710_p13, %p709_p4 }
  0x5b   : > { %p712_p10 = pnand %p711_p6, %p705_p7 }
  0x5d   : > { %715 = shalt.err (!%p712_p10)
}
  0x5e   : > { %561 = dma.hbm_to_vmem [thread:$0]  (!%p961_p11), %s957_s6, 256, %s959_s7, %s965_s9, %s790_s11, %s790_s11, %s791_s12  }
  0x5f   : > { %206 = sbr.rel (%p861_p8) target bundleno = 542 (0x21e), region = 36  ;;  %s999_s10 = sand.u32 (!%p861_p8), 1, %s778_s16  }
  0x60   : > { %s508_s20 = sshll.u32 (!%p861_p8), %s999_s10, 4  ;;  %s209_s29 = scalar_lea.sflag (!%p861_p8), [#allocation3], %s999_s10 }
  0x61   : > { %s212_s28 = scalar_lea.vmem (!%p861_p8), [#allocation2], %s508_s20  ;;  %p1078_p4 = scmp.ne.s32.totalorder (!%p861_p8), %s1071_s21, 0 }
  0x66   : > { %761 = dma.done.wait (%p1078_p4), %s209_s29, 256  }
  0x67   : > { %763 = vsyncadd (%p1078_p4), %s209_s29, 4294967040  ;;  %p1079_p7 = scmp.eq.s32.totalorder %s842_s19, 0 }
  0x69   : > { %765 = dma.done.wait (%p1079_p7), [#allocation6], 768   ;;  %p1080_p11 = pmov %p1079_p7 }
  0x6a   : > { %v610_v0 = vld [vmem:[%s212_s28] sm:$0xff]   ;;  %v611_v1 = vld [vmem:[%s212_s28 + $0x8] sm:$0xff]   ;;  %vm276_vm0 = vcmask 261120   ;;  %v391_v49 = vlaneseq  ;;  %s511_s21 = sshll.u32 %s999_s10, 3  ;;  %s523_s12 = sshll.u32 %s842_s19, 7 }
  0x6b   : > { %767 = vsyncadd (%p1080_p11), [#allocation6], 4294966528  ;;  %531 = vmatprep.subr.bf16.mxu0 %v610_v0  ;;  %v612_v2 = vld [vmem:[#allocation5] sm:$0xff]   ;;  %v613_v3 = vld [vmem:[#allocation5 + $0x8] sm:$0xff]   ;;  %s244_s6 = scalar_lea.vmem [#allocation8], %s511_s21  ;;  %s1019_s30 = scalar_lea.hbm %s1067_s4, %s523_s12 }
  0x6c   : > { %532 = vmatpush3.bf16.msra.mxu0 %v610_v0  ;;  %535 = vmatprep.mubr.msk.bf16.mxu0 %vm276_vm0, %v612_v2  ;;  %v372_v31 = vld [vmem:[#allocation7] sm:$0xff]  ;;  %v373_v33 = vld [vmem:[#allocation7 + $0x8] sm:$0xff]  ;;  %v374_v37 = vld [vmem:[#allocation7 + $0x10] sm:$0xff]  ;;  %v392_v52 = vshrl.u32 %v391_v49, 7  ;;  %s410_s7 = sshll.u32 %s244_s6, 4  ;;  %s397_s26 = scalar_lea.sflag [#allocation4], %s999_s10  ;;  %s1021_s7 = int_to_ptr.vmem [resolvable:$true] %s410_s7 }
  0x6d   : > { %533 = vmatprep.subr.bf16.mxu0 %v611_v1  ;;  %v375_v41 = vld [vmem:[#allocation7 + $0x18] sm:$0xff]  ;;  %v389_v54 = vld [vmem:[%s1066_s3] sm:$0x1]  ;;  %s716_s5 = scalar_lea.vmem %s1021_s7, 128  ;;  %p1081_p0 = scmp.ne.s32.totalorder %s1076_s27, 0 }
  0x6e   : > { %v393_v56 = vsub.s32 0, %v392_v52  ;;  %p717_p8 = scmp.ne.s32.totalorder %s1021_s7, %s716_s5  ;;  %s795_s19 = smov [#allocation8]  }
  0x6f   : > { %s720_s25 = sshll.u32 %s795_s19, 4  ;;  %s721_s25 = int_to_ptr.vmem [resolvable:$false] %s720_s25 }
  0x70   : > { %534 = vmatpush3.bf16.msra.mxu0 %v611_v1  ;;  %p718_p2 = pnand %p717_p8, %p1081_p0  ;;  %s722_s14 = scalar_lea.vmem %s721_s25, 256 }
  0x71   : > { %p723_p5 = scmp.lt.s32.totalorder %s1021_s7, %s721_s25  ;;  %p724_p9 = scmp.lt.s32.totalorder %s722_s14, %s716_s5 }
  0x72   : > { %p719_p3 = pneg %p718_p2 }
  0x73   : > { %536 = vmatmul.mubr.msk.bf16.vlgmr.msra.gmra.mrb[0].mxu0 %vm276_vm0, %v613_v3  ;;  %p725_p12 = por %p724_p9, %p723_p5 }
  0x75   : > { %p726_p1 = pnand %p725_p12, %p719_p3 }
 0x146   : > { %v537_v4 = vpop.f32.mrb[0].mxu0 }
 0x147   : > { %v520_v5 = vmul.f32 -1.442695, %v537_v4  ;;  %v317_v6 = vpop.f32.mrb[1].mxu0 }
 0x148   : > { %v518_v7 = vmul.f32 -1.442695, %v317_v6  ;;  %v538_v8 = vpop.f32.mrb[2].mxu0 }
 0x149   : > { %614 = vpow2.f32 %v520_v5  ;;  %v521_v9 = vmul.f32 -1.442695, %v538_v8  ;;  %v320_v10 = vpop.f32.mrb[3].mxu0 }
 0x14a   : > { %616 = vpow2.f32 %v518_v7  ;;  %v519_v11 = vmul.f32 -1.442695, %v320_v10 }
 0x14b   : > { %618 = vpow2.f32 %v521_v9 }
 0x14c   : > { %620 = vpow2.f32 %v519_v11 }
 0x153   : > { %v615_v12 = vpop.eup %614 }
 0x154   : > { %v617_v13 = vpop.eup %616  ;;  %v346_v14 = vadd.f32 1.0, %v615_v12 }
 0x155   : > { %v619_v15 = vpop.eup %618  ;;  %v344_v16 = vadd.f32 1.0, %v617_v13 }
 0x156   : > { %v621_v17 = vpop.eup %620  ;;  %622 = vrcp.f32 %v346_v14  ;;  %v347_v18 = vadd.f32 1.0, %v619_v15 }
 0x157   : > { %624 = vrcp.f32 %v344_v16  ;;  %v345_v19 = vadd.f32 1.0, %v621_v17 }
 0x158   : > { %626 = vrcp.f32 %v347_v18 }
 0x159   : > { %628 = vrcp.f32 %v345_v19 }
 0x160   : > { %v623_v20 = vpop.eup %622 }
 0x161   : > { %v625_v21 = vpop.eup %624  ;;  %v358_v22 = vmul.f32 %v623_v20, %v537_v4 }
 0x162   : > { %v627_v23 = vpop.eup %626  ;;  %v356_v24 = vmul.f32 %v625_v21, %v317_v6 }
 0x163   : > { %v629_v25 = vpop.eup %628  ;;  %364 = vadd.xlane.f32.xlu1 %v358_v22  ;;  %v359_v26 = vmul.f32 %v627_v23, %v538_v8 }
 0x164   : > { %360 = vadd.xlane.f32.xlu0 %v356_v24  ;;  %v357_v27 = vmul.f32 %v629_v25, %v320_v10 }
 0x167   : > { %366 = vadd.xlane.f32.xlu1 %v359_v26 }
 0x168   : > { %362 = vadd.xlane.f32.xlu0 %v357_v27 }
 0x1f0   : > { %v365_v28 = vpop.xlane.xlu1 %364 }
 0x1f1   : > { %v361_v29 = vpop.xlane.xlu0 %360  ;;  %v370_v35 = vmul.f32 0.015625, %v365_v28 }
 0x1f2   : > { %v368_v30 = vmul.f32 0.015625, %v361_v29 }
 0x1f3   : > { %v378_v42 = vmul.f32 %v374_v37, %v370_v35 }
 0x1f4   : > { %v367_v32 = vpop.xlane.xlu1 %366  ;;  %v376_v38 = vmul.f32 %v372_v31, %v368_v30 }
 0x1f5   : > { %v363_v34 = vpop.xlane.xlu0 %362  ;;  %v371_v39 = vmul.f32 0.015625, %v367_v32 }
 0x1f6   : > { %v369_v36 = vmul.f32 0.015625, %v363_v34 }
 0x1f7   : > { %v379_v44 = vmul.f32 %v375_v41, %v371_v39 }
 0x1f8   : > { %v377_v40 = vmul.f32 %v373_v33, %v369_v36 }
 0x1fa   : > { %v380_v43 = vadd.f32 %v377_v40, %v376_v38 }
 0x1fc   : > { %v381_v45 = vadd.f32 %v380_v43, %v378_v42 }
 0x1fe   : > { %v382_v46 = vadd.f32 %v381_v45, %v379_v44 }
 0x200   : > { %v383_v47 = vrot.slane %v382_v46, 4 }
 0x202   : > { %v384_v48 = vadd.f32 %v383_v47, %v382_v46 }
 0x204   : > { %v385_v50 = vrot.slane %v384_v48, 2 }
 0x206   : > { %v386_v51 = vadd.f32 %v385_v50, %v384_v48 }
 0x208   : > { %v387_v53 = vrot.slane %v386_v51, 1 }
 0x20a   : > { %v388_v55 = vadd.f32 %v387_v53, %v386_v51 }
 0x20c   : > { %v390_v57 = vadd.f32 %v389_v54, %v388_v55 }
 0x20e   : > { %v394_v58 = vrot.slane %v390_v57, %v393_v56 }
 0x210   : > { %395 = vst [vmem:[%s244_s6] sm:$0xff] %v394_v58 }
 0x211   : > { %729 = shalt.err (!%p726_p1)
}
 0x212   : > { %s730_s10 = scalar_lea.hbm %s1019_s30, 128  ;;  %s734_s28 = scalar_lea.hbm %s1067_s4, 256 }
 0x213   : > { %p731_p13 = scmp.ne.s32.totalorder %s1019_s30, %s730_s10  ;;  %p735_p4 = scmp.lt.u32.totalorder %s1019_s30, %s1067_s4 }
 0x214   : > { %p736_p7 = scmp.lt.u32.totalorder %s734_s28, %s730_s10  ;;  %p738_p8 = scmp.lt.u32.totalorder %s730_s10, %s1019_s30 }
 0x215   : > { %p732_p6 = pnand %p731_p13, %p1081_p0 }
 0x216   : > { %p737_p11 = por %p736_p7, %p735_p4 }
 0x217   : > { %p733_p10 = pneg %p732_p6 }
 0x218   : > { %p739_p2 = por %p738_p8, %p737_p11 }
 0x21a   : > { %p740_p3 = pnand %p739_p2, %p733_p10 }
 0x21c   : > { %743 = shalt.err (!%p740_p3)
}
 0x21d   : > { %549 = dma.vmem_to_hbm [thread:$0]  (%p1081_p0), %s1021_s7, 128, %s1019_s30, %s397_s26  }
 0x21e PF: > { %s422_s11 = sand.u32 1, %s774_s15   ;;  %p1082_p5 = scmp.ne.s32.totalorder %s1072_s22, 0 }
 0x21f   : > { %p1083_p9 = scmp.ge.s32.totalorder %s786_s18, 2  ;;  %s423_s12 = scalar_lea.sflag [#allocation4], %s422_s11 }
 0x221   : > { %p563_p12 = pnand %p1083_p9, %p1082_p5 }
 0x223   : > { %769 = dma.done.wait (!%p563_p12), %s423_s12, 128  }
 0x224   : > { %771 = vsyncadd (!%p563_p12), %s423_s12, 4294967168  ;;  %p18_p1 = scmp.ge.s32.totalorder %s934_s13, 4   ;;  %s1084_s15 = smov %s778_s16 }
 0x225   : > { %s1085_s16 = smov %s782_s17  ;;  %s1086_s17 = smov %s943_s24 }
 0x226   : > { %s1087_s18 = smov %s934_s13  ;;  %20 = sbr.rel (!%p18_p1) target bundleno = 6 (0x6), region = 89 }
 0x22d   :  { %428 = vsyncpa [#allocation3], 1 }
 0x22e   :  { %430 = vsyncpa [#allocation3 + $0x1], 1 }
 0x22f   :  { %431 = vsyncpa [#allocation6], 1 }
 0x230   :  { %432 = vsyncpa [#allocation4], 1 }
 0x231   :  { %434 = vsyncpa [#allocation4 + $0x1], 1 }

</bundles_post_ra>
